<compile_context>
chip_gen: v7x
topology: tpu7x:2x2x1
jax: 0.10.0
libtpu: 0.0.40
codegen_flags: <defaults>
</compile_context>

<pallas_src>
import math

import jax
import jax.numpy as jnp
from jax.experimental import pallas as pl
from jax.experimental.pallas import tpu as pltpu

MINUS_INF = -1000.0


# ----------------------------------------------------------------------------
# Fused QKV-projection + multi-head attention kernel (Bt batches per grid step)
# ----------------------------------------------------------------------------
def _make_mha_kernel(n_head, d_k, batch_block, seq_len, mxu_dtype, output_weight):
    H, S, Bt = n_head, seq_len, batch_block
    N = Bt * S

    def kernel(xq_ref, xk_ref, xv_ref, m_ref, w_ref, b_ref, o_ref, *attn_refs):
        d_in = xq_ref.shape[-1]

        # --- fused Q/K/V linear projections over all Bt*S rows -------------
        w = w_ref[...]                       # (3, d_model, d_in), mxu dtype
        b = b_ref[...]                       # (3, d_model, 1), f32

        def project(x_ref, i):
            # (Bt, S, d_in) -> (N, d_in): leading-dim merge, layout free.
            x = x_ref[...].reshape(N, d_in).astype(mxu_dtype)
            # (d_model, d_in) x (N, d_in) contracted on last dims -> (d_model, N)
            y = jax.lax.dot_general(w[i], x, (((1,), (1,)), ((), ())),
                                    preferred_element_type=jnp.float32)
            return y + b[i]                  # bias broadcasts over rows

        qT2 = project(xq_ref, 0)             # 1/sqrt(d_k) already folded into w[0], b[0]
        kT2 = project(xk_ref, 1)
        vT2 = project(xv_ref, 2)

        # Head-major views: (d_model, N) -> (H, d_k, N) is a free leading split.
        # Only q needs the per-head (d_k, N) -> (N, d_k) transpose.
        q3 = jnp.swapaxes(qT2.reshape(H, d_k, N), 1, 2).astype(mxu_dtype)  # (H, N, d_k)
        kT = kT2.reshape(H, d_k, N).astype(mxu_dtype)                      # (H, d_k, N)
        vT = vT2.reshape(H, d_k, N).astype(mxu_dtype)                      # (H, d_k, N)

        blocked = m_ref[...] != 0             # (Bt, S, S) — masked_fill condition

        for bi in range(Bt):                  # static unroll; batches are independent
            rows = slice(bi * S, (bi + 1) * S)

            # scores[h] = q[h] @ k[h]^T  (single batched dot over heads)
            s = jax.lax.dot_general(q3[:, rows, :], kT[:, :, rows],
                                    (((2,), (1,)), ((0,), (0,))),
                                    preferred_element_type=jnp.float32)    # (H, S, S)
            s = jnp.where(blocked[bi][None, :, :], MINUS_INF, s)

            # numerically-stable softmax over keys (kept in f32)
            s = s - jnp.max(s, axis=-1, keepdims=True)
            e = jnp.exp(s)
            denom = jnp.sum(e, axis=-1, keepdims=True)

            if output_weight:
                # exact normalization for the returned attention weights
                attn_refs[0][bi] = (e / denom).astype(attn_refs[0].dtype)

            p = (e * pl.reciprocal(denom, approx=True)).astype(mxu_dtype)

            # ctx[h] = p[h] @ v[h]  (single batched dot over heads)
            ctx = jax.lax.dot_general(p, vT[:, :, rows],
                                      (((2,), (2,)), ((0,), (0,))),
                                      preferred_element_type=jnp.float32)  # (H, S, d_k)
            octx = ctx.astype(o_ref.dtype)

            # x.transpose(1,2).view(B,S,H*d_k): write each head's context
            # directly into its lane slice of the output slab (no concat).
            for h in range(H):
                o_ref[bi, :, h * d_k:(h + 1) * d_k] = octx[h]

    return kernel


# ----------------------------------------------------------------------------
# Wrapper reproducing MultiHeadAttention.forward (output_linear=False default)
# ----------------------------------------------------------------------------
def multi_head_attention(params, query, key, value, mask, n_head,
                         output_weight=False, mxu_dtype=jnp.bfloat16,
                         batch_block=None):
    B, S, d_input = query.shape
    d_model = params["wq"].shape[0]
    assert d_model % n_head == 0
    d_k = d_model // n_head
    scale = 1.0 / math.sqrt(d_k)

    # ---- one-time layout prep (no in-kernel transposes of weights) --------
    # Fused weight stack (3, d_model, d_input), 1/sqrt(d_k) folded into Wq/bq.
    w_all = jnp.stack([params["wq"] * scale, params["wk"], params["wv"]],
                      axis=0).astype(mxu_dtype)
    b_all = jnp.stack([params["bq"] * scale, params["bk"], params["bv"]],
                      axis=0).reshape(3, d_model, 1).astype(jnp.float32)
    # Mask streamed as int8 (4x less HBM/VMEM than f32).
    mask_i8 = (mask > 0).astype(jnp.int8)

    # ---- pick a batch block so each grid step sees ~128 projection rows ----
    if batch_block is None:
        target = max(1, min(8, 128 // max(S, 1)))
        batch_block = 1
        for cand in range(min(B, target), 0, -1):
            if B % cand == 0:
                batch_block = cand
                break
    Bt = batch_block
    assert B % Bt == 0
    grid = (B // Bt,)

    kernel = _make_mha_kernel(n_head, d_k, Bt, S, mxu_dtype, output_weight)

    x_spec = pl.BlockSpec((Bt, S, d_input), lambda b: (b, 0, 0))
    m_spec = pl.BlockSpec((Bt, S, S), lambda b: (b, 0, 0))
    w_spec = pl.BlockSpec((3, d_model, d_input), lambda b: (0, 0, 0))
    b_spec = pl.BlockSpec((3, d_model, 1), lambda b: (0, 0, 0))

    o_shape = jax.ShapeDtypeStruct((B, S, d_model), query.dtype)
    o_spec = pl.BlockSpec((Bt, S, d_model), lambda b: (b, 0, 0))

    if output_weight:
        out_shape = (o_shape,
                     jax.ShapeDtypeStruct((B, n_head, S, S), query.dtype))
        out_specs = (o_spec,
                     pl.BlockSpec((Bt, n_head, S, S), lambda b: (b, 0, 0, 0)))
    else:
        out_shape = o_shape
        out_specs = o_spec

    # ---- explicit VMEM budget from the actual per-step footprint ----------
    itemsize = query.dtype.itemsize
    block_bytes = (3 * Bt * S * d_input * itemsize              # x blocks
                   + Bt * S * S * 1                             # int8 mask
                   + 3 * d_model * d_input * jnp.dtype(mxu_dtype).itemsize
                   + 3 * d_model * 4                            # biases
                   + Bt * S * d_model * itemsize)               # output block
    if output_weight:
        block_bytes += Bt * n_head * S * S * itemsize
    inter_bytes = 3 * d_model * Bt * S * 4 + 4 * n_head * S * S * 4
    est = 2 * block_bytes + inter_bytes                         # double-buffered blocks
    vmem_limit = int(min(max(2 * est, 16 * 1024 * 1024), 64 * 1024 * 1024))

    result = pl.pallas_call(
        kernel,
        out_shape=out_shape,
        grid=grid,
        in_specs=[x_spec, x_spec, x_spec, m_spec, w_spec, b_spec],
        out_specs=out_specs,
        compiler_params=pltpu.CompilerParams(
            dimension_semantics=("parallel",),
            vmem_limit_bytes=vmem_limit),
    )(query, key, value, mask_i8, w_all, b_all)

    if output_weight:
        return result[0], result[1]
    return result


# ----------------------------------------------------------------------------
# Pure-JAX reference (mirrors the torch code) for a correctness check
# ----------------------------------------------------------------------------
def reference_mha(params, query, key, value, mask, n_head):
    B, S, d_input = query.shape
    d_model = params["wq"].shape[0]
    d_k = d_model // n_head

    def proj(x, w, b):
        y = x.reshape(B * S, d_input) @ w.T + b
        return y.reshape(B, S, n_head, d_k).transpose(0, 2, 1, 3)

    q = proj(query, params["wq"], params["bq"])
    k = proj(key, params["wk"], params["bk"])
    v = proj(value, params["wv"], params["bv"])
    scores = jnp.einsum("bhqd,bhkd->bhqk", q, k) / math.sqrt(d_k)
    scores = jnp.where(mask[:, None, :, :] > 0, MINUS_INF, scores)
    p = jax.nn.softmax(scores, axis=-1)
    x = jnp.einsum("bhqk,bhkd->bhqd", p, v)
    out = x.transpose(0, 2, 1, 3).reshape(B, S, n_head * d_k)
    return out, p


if __name__ == "__main__":
    # Module config (small, consistent with the forward pass)
    n_head, d_input, d_model = 4, 16, 32
    B, S = 2, 8

    key_root = jax.random.PRNGKey(0)
    ks = jax.random.split(key_root, 10)

    # Deterministic parameter init (nn.Linear shapes: W (d_model, d_input), b (d_model,))
    bound = 1.0 / math.sqrt(d_input)
    params = {
        "wq": jax.random.uniform(ks[0], (d_model, d_input), jnp.float32, -bound, bound),
        "bq": jax.random.uniform(ks[1], (d_model,), jnp.float32, -bound, bound),
        "wk": jax.random.uniform(ks[2], (d_model, d_input), jnp.float32, -bound, bound),
        "bk": jax.random.uniform(ks[3], (d_model,), jnp.float32, -bound, bound),
        "wv": jax.random.uniform(ks[4], (d_model, d_input), jnp.float32, -bound, bound),
        "bv": jax.random.uniform(ks[5], (d_model,), jnp.float32, -bound, bound),
    }

    query = jax.random.normal(ks[6], (B, S, d_input), jnp.float32)
    key_in = jax.random.normal(ks[7], (B, S, d_input), jnp.float32)
    value = jax.random.normal(ks[8], (B, S, d_input), jnp.float32)
    # Causal-style mask: positions with mask > 0 are blocked (future positions).
    mask = jnp.triu(jnp.ones((S, S), jnp.float32), k=1)[None].repeat(B, axis=0)

    ref_out, ref_attn = reference_mha(params, query, key_in, value, mask, n_head)

    # Default path (bf16 MXU operands, no attention weights returned).
    out_plain = multi_head_attention(params, query, key_in, value, mask, n_head)
    out_plain = jax.block_until_ready(out_plain)

    # output_weight=True path with default bf16 MXU operands.
    out_bf, attn_bf = multi_head_attention(params, query, key_in, value, mask,
                                           n_head, output_weight=True)
    jax.block_until_ready((out_bf, attn_bf))

    # f32 MXU path for a tight numerical check of the kernel structure.
    out_f32, attn_f32 = multi_head_attention(params, query, key_in, value, mask,
                                             n_head, output_weight=True,
                                             mxu_dtype=jnp.float32)
    jax.block_until_ready((out_f32, attn_f32))

    assert out_plain.shape == (B, S, d_model)
    assert out_bf.shape == (B, S, d_model)
    assert attn_bf.shape == (B, n_head, S, S)

    # f32 path: only pl.reciprocal(approx=True) on the context normalization
    # separates it from the reference.
    assert jnp.allclose(out_f32, ref_out, atol=5e-3, rtol=5e-3)
    assert jnp.allclose(attn_f32, ref_attn, atol=5e-3, rtol=5e-3)

    # bf16-MXU path: looser tolerance for bf16 operand rounding.
    assert jnp.allclose(out_bf, ref_out, atol=2.5e-2, rtol=2.5e-2)
    assert jnp.allclose(attn_bf, ref_attn, atol=2.5e-2, rtol=2.5e-2)
    assert jnp.allclose(out_plain, out_bf, atol=1e-6, rtol=1e-6)

    print("KERNEL_OK")
</pallas_src>

<mosaic_0001>
module attributes {stable_mosaic.version = 11 : i64} {
  func.func @kernel(%arg0: i32, %arg1: memref<2x8x16xf32, #tpu.memory_space<vmem>>, %arg2: memref<2x8x16xf32, #tpu.memory_space<vmem>>, %arg3: memref<2x8x16xf32, #tpu.memory_space<vmem>>, %arg4: memref<2x8x8xi8, #tpu.memory_space<vmem>>, %arg5: memref<3x32x16xbf16, #tpu.memory_space<vmem>>, %arg6: memref<3x32x1xf32, #tpu.memory_space<vmem>>, %arg7: memref<2x8x32xf32, #tpu.memory_space<vmem>>) attributes {dimension_semantics = [#tpu.dimension_semantics<parallel>], iteration_bounds = array<i64: 1>, scalar_prefetch = 0 : i64, scratch_operands = 0 : i64, tpu.core_type = #tpu.core_type<tc>, window_params = [{transform_indices = @transform_0, window_bounds = array<i64: 2, 8, 16>}, {transform_indices = @transform_1, window_bounds = array<i64: 2, 8, 16>}, {transform_indices = @transform_2, window_bounds = array<i64: 2, 8, 16>}, {transform_indices = @transform_3, window_bounds = array<i64: 2, 8, 8>}, {pipeline_mode = #tpu.pipeline_mode<synchronous>, transform_indices = @transform_4, window_bounds = array<i64: 3, 32, 16>}, {pipeline_mode = #tpu.pipeline_mode<synchronous>, transform_indices = @transform_5, window_bounds = array<i64: 3, 32, 1>}, {transform_indices = @transform_6, window_bounds = array<i64: 2, 8, 32>}]} {
    %c0 = arith.constant 0 : index
    %c0_0 = arith.constant 0 : index
    %c0_1 = arith.constant 0 : index
    %0 = vector.load %arg5[%c0, %c0_0, %c0_1] : memref<3x32x16xbf16, #tpu.memory_space<vmem>>, vector<3x32x16xbf16>
    %c0_2 = arith.constant 0 : index
    %c0_3 = arith.constant 0 : index
    %c0_4 = arith.constant 0 : index
    %1 = vector.load %arg6[%c0_2, %c0_3, %c0_4] : memref<3x32x1xf32, #tpu.memory_space<vmem>>, vector<3x32x1xf32>
    %c0_5 = arith.constant 0 : index
    %c0_6 = arith.constant 0 : index
    %c0_7 = arith.constant 0 : index
    %2 = vector.load %arg1[%c0_5, %c0_6, %c0_7] : memref<2x8x16xf32, #tpu.memory_space<vmem>>, vector<2x8x16xf32>
    %3 = vector.shape_cast %2 : vector<2x8x16xf32> to vector<16x16xf32>
    %4 = arith.truncf %3 : vector<16x16xf32> to vector<16x16xbf16>
    %5 = vector.extract_strided_slice %0 {offsets = [0, 0, 0], sizes = [1, 32, 16], strides = [1, 1, 1]} : vector<3x32x16xbf16> to vector<1x32x16xbf16>
    %6 = vector.shape_cast %5 : vector<1x32x16xbf16> to vector<32x16xbf16>
    %cst = arith.constant dense<0.000000e+00> : vector<32x16xf32>
    %7 = tpu.matmul %6, %4, %cst {dimension_numbers = #tpu.dot_dimension_numbers<[1], [1], [0], [0], [0, 0, 1, 0], [], []>} : vector<32x16xbf16>, vector<16x16xbf16>, vector<32x16xf32> -> vector<32x16xf32>
    %8 = vector.extract_strided_slice %1 {offsets = [0, 0, 0], sizes = [1, 32, 1], strides = [1, 1, 1]} : vector<3x32x1xf32> to vector<1x32x1xf32>
    %9 = vector.shape_cast %8 : vector<1x32x1xf32> to vector<32x1xf32>
    %10 = vector.broadcast %9 : vector<32x1xf32> to vector<32x16xf32>
    %11 = arith.addf %7, %10 : vector<32x16xf32>
    %c0_8 = arith.constant 0 : index
    %c0_9 = arith.constant 0 : index
    %c0_10 = arith.constant 0 : index
    %12 = vector.load %arg2[%c0_8, %c0_9, %c0_10] : memref<2x8x16xf32, #tpu.memory_space<vmem>>, vector<2x8x16xf32>
    %13 = vector.shape_cast %12 : vector<2x8x16xf32> to vector<16x16xf32>
    %14 = arith.truncf %13 : vector<16x16xf32> to vector<16x16xbf16>
    %15 = vector.extract_strided_slice %0 {offsets = [1, 0, 0], sizes = [1, 32, 16], strides = [1, 1, 1]} : vector<3x32x16xbf16> to vector<1x32x16xbf16>
    %16 = vector.shape_cast %15 : vector<1x32x16xbf16> to vector<32x16xbf16>
    %cst_11 = arith.constant dense<0.000000e+00> : vector<32x16xf32>
    %17 = tpu.matmul %16, %14, %cst_11 {dimension_numbers = #tpu.dot_dimension_numbers<[1], [1], [0], [0], [0, 0, 1, 0], [], []>} : vector<32x16xbf16>, vector<16x16xbf16>, vector<32x16xf32> -> vector<32x16xf32>
    %18 = vector.extract_strided_slice %1 {offsets = [1, 0, 0], sizes = [1, 32, 1], strides = [1, 1, 1]} : vector<3x32x1xf32> to vector<1x32x1xf32>
    %19 = vector.shape_cast %18 : vector<1x32x1xf32> to vector<32x1xf32>
    %20 = vector.broadcast %19 : vector<32x1xf32> to vector<32x16xf32>
    %21 = arith.addf %17, %20 : vector<32x16xf32>
    %c0_12 = arith.constant 0 : index
    %c0_13 = arith.constant 0 : index
    %c0_14 = arith.constant 0 : index
    %22 = vector.load %arg3[%c0_12, %c0_13, %c0_14] : memref<2x8x16xf32, #tpu.memory_space<vmem>>, vector<2x8x16xf32>
    %23 = vector.shape_cast %22 : vector<2x8x16xf32> to vector<16x16xf32>
    %24 = arith.truncf %23 : vector<16x16xf32> to vector<16x16xbf16>
    %25 = vector.extract_strided_slice %0 {offsets = [2, 0, 0], sizes = [1, 32, 16], strides = [1, 1, 1]} : vector<3x32x16xbf16> to vector<1x32x16xbf16>
    %26 = vector.shape_cast %25 : vector<1x32x16xbf16> to vector<32x16xbf16>
    %cst_15 = arith.constant dense<0.000000e+00> : vector<32x16xf32>
    %27 = tpu.matmul %26, %24, %cst_15 {dimension_numbers = #tpu.dot_dimension_numbers<[1], [1], [0], [0], [0, 0, 1, 0], [], []>} : vector<32x16xbf16>, vector<16x16xbf16>, vector<32x16xf32> -> vector<32x16xf32>
    %28 = vector.extract_strided_slice %1 {offsets = [2, 0, 0], sizes = [1, 32, 1], strides = [1, 1, 1]} : vector<3x32x1xf32> to vector<1x32x1xf32>
    %29 = vector.shape_cast %28 : vector<1x32x1xf32> to vector<32x1xf32>
    %30 = vector.broadcast %29 : vector<32x1xf32> to vector<32x16xf32>
    %31 = arith.addf %27, %30 : vector<32x16xf32>
    %32 = vector.shape_cast %11 : vector<32x16xf32> to vector<4x8x16xf32>
    %33 = tpu.transpose %32, [0, 2, 1] : vector<4x8x16xf32> -> vector<4x16x8xf32>
    %34 = arith.truncf %33 : vector<4x16x8xf32> to vector<4x16x8xbf16>
    %35 = vector.shape_cast %21 : vector<32x16xf32> to vector<4x8x16xf32>
    %36 = arith.truncf %35 : vector<4x8x16xf32> to vector<4x8x16xbf16>
    %37 = vector.shape_cast %31 : vector<32x16xf32> to vector<4x8x16xf32>
    %38 = arith.truncf %37 : vector<4x8x16xf32> to vector<4x8x16xbf16>
    %c0_16 = arith.constant 0 : index
    %c0_17 = arith.constant 0 : index
    %c0_18 = arith.constant 0 : index
    %39 = vector.load %arg4[%c0_16, %c0_17, %c0_18] : memref<2x8x8xi8, #tpu.memory_space<vmem>>, vector<2x8x8xi8>
    %c0_i8 = arith.constant 0 : i8
    %40 = vector.broadcast %c0_i8 : i8 to vector<2x8x8xi8>
    %41 = arith.cmpi ne, %39, %40 : vector<2x8x8xi8>
    %42 = vector.extract_strided_slice %34 {offsets = [0, 0, 0], sizes = [4, 8, 8], strides = [1, 1, 1]} : vector<4x16x8xbf16> to vector<4x8x8xbf16>
    %43 = vector.extract_strided_slice %36 {offsets = [0, 0, 0], sizes = [4, 8, 8], strides = [1, 1, 1]} : vector<4x8x16xbf16> to vector<4x8x8xbf16>
    %cst_19 = arith.constant dense<0.000000e+00> : vector<4x8x8xf32>
    %44 = tpu.matmul %42, %43, %cst_19 {dimension_numbers = #tpu.dot_dimension_numbers<[2], [1], [1], [2], [0, 0, 0, 1, 1, 2], [0], [0]>} : vector<4x8x8xbf16>, vector<4x8x8xbf16>, vector<4x8x8xf32> -> vector<4x8x8xf32>
    %45 = vector.extract_strided_slice %41 {offsets = [0, 0, 0], sizes = [1, 8, 8], strides = [1, 1, 1]} : vector<2x8x8xi1> to vector<1x8x8xi1>
    %46 = vector.shape_cast %45 : vector<1x8x8xi1> to vector<8x8xi1>
    %47 = vector.shape_cast %46 : vector<8x8xi1> to vector<1x8x8xi1>
    %cst_20 = arith.constant -1.000000e+03 : f32
    %48 = vector.shape_cast %47 : vector<1x8x8xi1> to vector<1x8x8xi1>
    %49 = vector.broadcast %48 : vector<1x8x8xi1> to vector<4x8x8xi1>
    %50 = vector.broadcast %cst_20 : f32 to vector<4x8x8xf32>
    %51 = arith.select %49, %50, %44 : vector<4x8x8xi1>, vector<4x8x8xf32>
    %cst_21 = arith.constant dense<0xFF800000> : vector<4x8xf32>
    %52 = vector.multi_reduction <maximumf>, %51, %cst_21 [2] : vector<4x8x8xf32> to vector<4x8xf32>
    %53 = vector.shape_cast %52 : vector<4x8xf32> to vector<4x8x1xf32>
    %54 = vector.broadcast %53 : vector<4x8x1xf32> to vector<4x8x8xf32>
    %55 = arith.subf %51, %54 : vector<4x8x8xf32>
    %56 = math.exp %55 : vector<4x8x8xf32>
    %cst_22 = arith.constant dense<0.000000e+00> : vector<4x8xf32>
    %57 = vector.multi_reduction <add>, %56, %cst_22 [2] : vector<4x8x8xf32> to vector<4x8xf32>
    %58 = vector.shape_cast %57 : vector<4x8xf32> to vector<4x8x1xf32>
    %59 = tpu.reciprocal %58 {approx = true} : vector<4x8x1xf32> -> vector<4x8x1xf32>
    %60 = vector.broadcast %59 : vector<4x8x1xf32> to vector<4x8x8xf32>
    %61 = arith.mulf %56, %60 : vector<4x8x8xf32>
    %62 = arith.truncf %61 : vector<4x8x8xf32> to vector<4x8x8xbf16>
    %63 = vector.extract_strided_slice %38 {offsets = [0, 0, 0], sizes = [4, 8, 8], strides = [1, 1, 1]} : vector<4x8x16xbf16> to vector<4x8x8xbf16>
    %cst_23 = arith.constant dense<0.000000e+00> : vector<4x8x8xf32>
    %64 = tpu.matmul %62, %63, %cst_23 {dimension_numbers = #tpu.dot_dimension_numbers<[2], [2], [1], [1], [0, 0, 0, 1, 1, 1], [0], [0]>} : vector<4x8x8xbf16>, vector<4x8x8xbf16>, vector<4x8x8xf32> -> vector<4x8x8xf32>
    %65 = vector.extract_strided_slice %64 {offsets = [0, 0, 0], sizes = [1, 8, 8], strides = [1, 1, 1]} : vector<4x8x8xf32> to vector<1x8x8xf32>
    %66 = vector.shape_cast %65 : vector<1x8x8xf32> to vector<8x8xf32>
    %c0_24 = arith.constant 0 : index
    %c0_25 = arith.constant 0 : index
    %c0_26 = arith.constant 0 : index
    %67 = vector.load %arg7[%c0_24, %c0_25, %c0_26] : memref<2x8x32xf32, #tpu.memory_space<vmem>>, vector<1x8x8xf32>
    %68 = vector.shape_cast %67 : vector<1x8x8xf32> to vector<8x8xf32>
    %69 = vector.shape_cast %66 : vector<8x8xf32> to vector<1x8x8xf32>
    tpu.vector_store %arg7[%c0_24, %c0_25, %c0_26], %69 {strides = array<i32>} : memref<2x8x32xf32, #tpu.memory_space<vmem>>, vector<1x8x8xf32>,
    %70 = vector.extract_strided_slice %64 {offsets = [1, 0, 0], sizes = [1, 8, 8], strides = [1, 1, 1]} : vector<4x8x8xf32> to vector<1x8x8xf32>
    %71 = vector.shape_cast %70 : vector<1x8x8xf32> to vector<8x8xf32>
    %c0_27 = arith.constant 0 : index
    %c0_28 = arith.constant 0 : index
    %c8 = arith.constant 8 : index
    %72 = vector.load %arg7[%c0_27, %c0_28, %c8] : memref<2x8x32xf32, #tpu.memory_space<vmem>>, vector<1x8x8xf32>
    %73 = vector.shape_cast %72 : vector<1x8x8xf32> to vector<8x8xf32>
    %74 = vector.shape_cast %71 : vector<8x8xf32> to vector<1x8x8xf32>
    tpu.vector_store %arg7[%c0_27, %c0_28, %c8], %74 {strides = array<i32>} : memref<2x8x32xf32, #tpu.memory_space<vmem>>, vector<1x8x8xf32>,
    %75 = vector.extract_strided_slice %64 {offsets = [2, 0, 0], sizes = [1, 8, 8], strides = [1, 1, 1]} : vector<4x8x8xf32> to vector<1x8x8xf32>
    %76 = vector.shape_cast %75 : vector<1x8x8xf32> to vector<8x8xf32>
    %c0_29 = arith.constant 0 : index
    %c0_30 = arith.constant 0 : index
    %c16 = arith.constant 16 : index
    %77 = vector.load %arg7[%c0_29, %c0_30, %c16] : memref<2x8x32xf32, #tpu.memory_space<vmem>>, vector<1x8x8xf32>
    %78 = vector.shape_cast %77 : vector<1x8x8xf32> to vector<8x8xf32>
    %79 = vector.shape_cast %76 : vector<8x8xf32> to vector<1x8x8xf32>
    tpu.vector_store %arg7[%c0_29, %c0_30, %c16], %79 {strides = array<i32>} : memref<2x8x32xf32, #tpu.memory_space<vmem>>, vector<1x8x8xf32>,
    %80 = vector.extract_strided_slice %64 {offsets = [3, 0, 0], sizes = [1, 8, 8], strides = [1, 1, 1]} : vector<4x8x8xf32> to vector<1x8x8xf32>
    %81 = vector.shape_cast %80 : vector<1x8x8xf32> to vector<8x8xf32>
    %c0_31 = arith.constant 0 : index
    %c0_32 = arith.constant 0 : index
    %c24 = arith.constant 24 : index
    %82 = vector.load %arg7[%c0_31, %c0_32, %c24] : memref<2x8x32xf32, #tpu.memory_space<vmem>>, vector<1x8x8xf32>
    %83 = vector.shape_cast %82 : vector<1x8x8xf32> to vector<8x8xf32>
    %84 = vector.shape_cast %81 : vector<8x8xf32> to vector<1x8x8xf32>
    tpu.vector_store %arg7[%c0_31, %c0_32, %c24], %84 {strides = array<i32>} : memref<2x8x32xf32, #tpu.memory_space<vmem>>, vector<1x8x8xf32>,
    %85 = vector.extract_strided_slice %34 {offsets = [0, 8, 0], sizes = [4, 8, 8], strides = [1, 1, 1]} : vector<4x16x8xbf16> to vector<4x8x8xbf16>
    %86 = vector.extract_strided_slice %36 {offsets = [0, 0, 8], sizes = [4, 8, 8], strides = [1, 1, 1]} : vector<4x8x16xbf16> to vector<4x8x8xbf16>
    %cst_33 = arith.constant dense<0.000000e+00> : vector<4x8x8xf32>
    %87 = tpu.matmul %85, %86, %cst_33 {dimension_numbers = #tpu.dot_dimension_numbers<[2], [1], [1], [2], [0, 0, 0, 1, 1, 2], [0], [0]>} : vector<4x8x8xbf16>, vector<4x8x8xbf16>, vector<4x8x8xf32> -> vector<4x8x8xf32>
    %88 = vector.extract_strided_slice %41 {offsets = [1, 0, 0], sizes = [1, 8, 8], strides = [1, 1, 1]} : vector<2x8x8xi1> to vector<1x8x8xi1>
    %89 = vector.shape_cast %88 : vector<1x8x8xi1> to vector<8x8xi1>
    %90 = vector.shape_cast %89 : vector<8x8xi1> to vector<1x8x8xi1>
    %cst_34 = arith.constant -1.000000e+03 : f32
    %91 = vector.shape_cast %90 : vector<1x8x8xi1> to vector<1x8x8xi1>
    %92 = vector.broadcast %91 : vector<1x8x8xi1> to vector<4x8x8xi1>
    %93 = vector.broadcast %cst_34 : f32 to vector<4x8x8xf32>
    %94 = arith.select %92, %93, %87 : vector<4x8x8xi1>, vector<4x8x8xf32>
    %cst_35 = arith.constant dense<0xFF800000> : vector<4x8xf32>
    %95 = vector.multi_reduction <maximumf>, %94, %cst_35 [2] : vector<4x8x8xf32> to vector<4x8xf32>
    %96 = vector.shape_cast %95 : vector<4x8xf32> to vector<4x8x1xf32>
    %97 = vector.broadcast %96 : vector<4x8x1xf32> to vector<4x8x8xf32>
    %98 = arith.subf %94, %97 : vector<4x8x8xf32>
    %99 = math.exp %98 : vector<4x8x8xf32>
    %cst_36 = arith.constant dense<0.000000e+00> : vector<4x8xf32>
    %100 = vector.multi_reduction <add>, %99, %cst_36 [2] : vector<4x8x8xf32> to vector<4x8xf32>
    %101 = vector.shape_cast %100 : vector<4x8xf32> to vector<4x8x1xf32>
    %102 = tpu.reciprocal %101 {approx = true} : vector<4x8x1xf32> -> vector<4x8x1xf32>
    %103 = vector.broadcast %102 : vector<4x8x1xf32> to vector<4x8x8xf32>
    %104 = arith.mulf %99, %103 : vector<4x8x8xf32>
    %105 = arith.truncf %104 : vector<4x8x8xf32> to vector<4x8x8xbf16>
    %106 = vector.extract_strided_slice %38 {offsets = [0, 0, 8], sizes = [4, 8, 8], strides = [1, 1, 1]} : vector<4x8x16xbf16> to vector<4x8x8xbf16>
    %cst_37 = arith.constant dense<0.000000e+00> : vector<4x8x8xf32>
    %107 = tpu.matmul %105, %106, %cst_37 {dimension_numbers = #tpu.dot_dimension_numbers<[2], [2], [1], [1], [0, 0, 0, 1, 1, 1], [0], [0]>} : vector<4x8x8xbf16>, vector<4x8x8xbf16>, vector<4x8x8xf32> -> vector<4x8x8xf32>
    %108 = vector.extract_strided_slice %107 {offsets = [0, 0, 0], sizes = [1, 8, 8], strides = [1, 1, 1]} : vector<4x8x8xf32> to vector<1x8x8xf32>
    %109 = vector.shape_cast %108 : vector<1x8x8xf32> to vector<8x8xf32>
    %c1 = arith.constant 1 : index
    %c0_38 = arith.constant 0 : index
    %c0_39 = arith.constant 0 : index
    %110 = vector.load %arg7[%c1, %c0_38, %c0_39] : memref<2x8x32xf32, #tpu.memory_space<vmem>>, vector<1x8x8xf32>
    %111 = vector.shape_cast %110 : vector<1x8x8xf32> to vector<8x8xf32>
    %112 = vector.shape_cast %109 : vector<8x8xf32> to vector<1x8x8xf32>
    tpu.vector_store %arg7[%c1, %c0_38, %c0_39], %112 {strides = array<i32>} : memref<2x8x32xf32, #tpu.memory_space<vmem>>, vector<1x8x8xf32>,
    %113 = vector.extract_strided_slice %107 {offsets = [1, 0, 0], sizes = [1, 8, 8], strides = [1, 1, 1]} : vector<4x8x8xf32> to vector<1x8x8xf32>
    %114 = vector.shape_cast %113 : vector<1x8x8xf32> to vector<8x8xf32>
    %c1_40 = arith.constant 1 : index
    %c0_41 = arith.constant 0 : index
    %c8_42 = arith.constant 8 : index
    %115 = vector.load %arg7[%c1_40, %c0_41, %c8_42] : memref<2x8x32xf32, #tpu.memory_space<vmem>>, vector<1x8x8xf32>
    %116 = vector.shape_cast %115 : vector<1x8x8xf32> to vector<8x8xf32>
    %117 = vector.shape_cast %114 : vector<8x8xf32> to vector<1x8x8xf32>
    tpu.vector_store %arg7[%c1_40, %c0_41, %c8_42], %117 {strides = array<i32>} : memref<2x8x32xf32, #tpu.memory_space<vmem>>, vector<1x8x8xf32>,
    %118 = vector.extract_strided_slice %107 {offsets = [2, 0, 0], sizes = [1, 8, 8], strides = [1, 1, 1]} : vector<4x8x8xf32> to vector<1x8x8xf32>
    %119 = vector.shape_cast %118 : vector<1x8x8xf32> to vector<8x8xf32>
    %c1_43 = arith.constant 1 : index
    %c0_44 = arith.constant 0 : index
    %c16_45 = arith.constant 16 : index
    %120 = vector.load %arg7[%c1_43, %c0_44, %c16_45] : memref<2x8x32xf32, #tpu.memory_space<vmem>>, vector<1x8x8xf32>
    %121 = vector.shape_cast %120 : vector<1x8x8xf32> to vector<8x8xf32>
    %122 = vector.shape_cast %119 : vector<8x8xf32> to vector<1x8x8xf32>
    tpu.vector_store %arg7[%c1_43, %c0_44, %c16_45], %122 {strides = array<i32>} : memref<2x8x32xf32, #tpu.memory_space<vmem>>, vector<1x8x8xf32>,
    %123 = vector.extract_strided_slice %107 {offsets = [3, 0, 0], sizes = [1, 8, 8], strides = [1, 1, 1]} : vector<4x8x8xf32> to vector<1x8x8xf32>
    %124 = vector.shape_cast %123 : vector<1x8x8xf32> to vector<8x8xf32>
    %c1_46 = arith.constant 1 : index
    %c0_47 = arith.constant 0 : index
    %c24_48 = arith.constant 24 : index
    %125 = vector.load %arg7[%c1_46, %c0_47, %c24_48] : memref<2x8x32xf32, #tpu.memory_space<vmem>>, vector<1x8x8xf32>
    %126 = vector.shape_cast %125 : vector<1x8x8xf32> to vector<8x8xf32>
    %127 = vector.shape_cast %124 : vector<8x8xf32> to vector<1x8x8xf32>
    tpu.vector_store %arg7[%c1_46, %c0_47, %c24_48], %127 {strides = array<i32>} : memref<2x8x32xf32, #tpu.memory_space<vmem>>, vector<1x8x8xf32>,
    return
  }
  func.func @transform_0(%arg0: i32) -> (i32, i32, i32) {
    %c0_i32 = arith.constant 0 : i32
    %c0_i32_0 = arith.constant 0 : i32
    %c0_i32_1 = arith.constant 0 : i32
    return %arg0, %c0_i32, %c0_i32_0 : i32, i32, i32
  }
  func.func @transform_1(%arg0: i32) -> (i32, i32, i32) {
    %c0_i32 = arith.constant 0 : i32
    %c0_i32_0 = arith.constant 0 : i32
    %c0_i32_1 = arith.constant 0 : i32
    return %arg0, %c0_i32, %c0_i32_0 : i32, i32, i32
  }
  func.func @transform_2(%arg0: i32) -> (i32, i32, i32) {
    %c0_i32 = arith.constant 0 : i32
    %c0_i32_0 = arith.constant 0 : i32
    %c0_i32_1 = arith.constant 0 : i32
    return %arg0, %c0_i32, %c0_i32_0 : i32, i32, i32
  }
  func.func @transform_3(%arg0: i32) -> (i32, i32, i32) {
    %c0_i32 = arith.constant 0 : i32
    %c0_i32_0 = arith.constant 0 : i32
    %c0_i32_1 = arith.constant 0 : i32
    return %arg0, %c0_i32, %c0_i32_0 : i32, i32, i32
  }
  func.func @transform_4(%arg0: i32) -> (i32, i32, i32) {
    %c0_i32 = arith.constant 0 : i32
    %c0_i32_0 = arith.constant 0 : i32
    %c0_i32_1 = arith.constant 0 : i32
    %c0_i32_2 = arith.constant 0 : i32
    return %c0_i32, %c0_i32_0, %c0_i32_1 : i32, i32, i32
  }
  func.func @transform_5(%arg0: i32) -> (i32, i32, i32) {
    %c0_i32 = arith.constant 0 : i32
    %c0_i32_0 = arith.constant 0 : i32
    %c0_i32_1 = arith.constant 0 : i32
    %c0_i32_2 = arith.constant 0 : i32
    return %c0_i32, %c0_i32_0, %c0_i32_1 : i32, i32, i32
  }
  func.func @transform_6(%arg0: i32) -> (i32, i32, i32) {
    %c0_i32 = arith.constant 0 : i32
    %c0_i32_0 = arith.constant 0 : i32
    %c0_i32_1 = arith.constant 0 : i32
    return %arg0, %c0_i32, %c0_i32_0 : i32, i32, i32
  }
}

</mosaic_0001>

<bundles_post_ra>
// kernel: tpu_custom_call.1
= control target key start
LH: loop header
LB: loop body
LE: loop exit
PB: predicated region body
PF: predicated region fallthrough
CT: control target
= control target key end

     0   :  { %vm84_vm0 = vcmask 130048   ;;  %v1688_v5 = vmov 0   ;;  %s2054_s0 = inlined_call_operand.vmem [shape: f32[2,8,16], index: 0, kind: input, shape index: {}]   ;;  %s2055_s1 = inlined_call_operand.vmem [shape: f32[2,8,16], index: 1, kind: input, shape index: {}]   ;;  %s2056_s2 = inlined_call_operand.vmem [shape: f32[2,8,16], index: 2, kind: input, shape index: {}]   ;;  %s2057_s3 = inlined_call_operand.vmem [shape: s8[2,8,8], index: 3, kind: input, shape index: {}]   ;;  %s2058_s4 = inlined_call_operand.vmem [shape: bf16[3,32,16], index: 4, kind: input, shape index: {}]   ;;  %s2059_s5 = inlined_call_operand.vmem [shape: f32[3,32,1], index: 5, kind: input, shape index: {}]   ;;  %s2060_s6 = inlined_call_operand.hbm [shape: f32[2,8,32], index: 6, kind: output, shape index: {}]  }
   0x1   :  { %v51_v0 = vld [vmem:[%s2054_s0] sm:$0xff]  ;;  %v52_v1 = vld [vmem:[%s2054_s0 + $0x8] sm:$0xff]  ;;  %1600 = vset.pattern.permute.xlu0 %v1688_v5  ;;  %1601 = vset.pattern.permute.xlu1 %v1688_v5  ;;  %v1627_v9 = vld [vmem:[%s2058_s4 + $0x10] sm:$0xff]  }
   0x2   :  { %v143_v2 = vld [vmem:[%s2055_s1] sm:$0xff]  ;;  %v53_v3 = vpack.c.bf16 %v52_v1, %v51_v0  ;;  %v144_v4 = vld [vmem:[%s2055_s1 + $0x8] sm:$0xff]  ;;  %1482 = vmatprep.mubr.msk.bf16.mxu1 %vm84_vm0, %v1627_v9  ;;  %v41_v13 = vld [vmem:[%s2059_s5 + $0x10] sm:$0xff] }
   0x3   :  { %v145_v6 = vpack.c.bf16 %v144_v4, %v143_v2  ;;  %v1626_v7 = vld [vmem:[%s2058_s4] sm:$0xff]   ;;  %v1628_v12 = vld [vmem:[%s2058_s4 + $0x8] sm:$0xff]   ;;  %v1629_v14 = vld [vmem:[%s2058_s4 + $0x18] sm:$0xff]   ;;  %66 = vperm.xlu1 %1601, %v41_v13  }
   0x4   :  { %1588 = vmatprep.subr.msk.bf16.mxu0 %vm84_vm0, %v53_v3  ;;  %v92_v8 = vsel %vm84_vm0, %v53_v3, 0  ;;  %1476 = vmatprep.mubr.msk.bf16.mxu0 %vm84_vm0, %v1626_v7  ;;  %v39_v11 = vld [vmem:[%s2059_s5] sm:$0xff]  ;;  %v40_v15 = vld [vmem:[%s2059_s5 + $0x8] sm:$0xff]  ;;  %v42_v16 = vld [vmem:[%s2059_s5 + $0x18] sm:$0xff] }
   0x5   :  { %1589 = vmatprep.subr.msk.bf16.mxu1 %vm84_vm0, %v145_v6  ;;  %1475 = vmatpush3.bf16.xpose.msra.mxu0 %v92_v8  ;;  %v183_v10 = vsel %vm84_vm0, %v145_v6, 0 }
   0x6   :  { %1481 = vmatpush3.bf16.xpose.msra.mxu1 %v183_v10  ;;  %56 = vperm.xlu0 %1600, %v39_v11  }
   0x7   :  { %11 = vsyncpa [#allocation3], 0  ;;  %v43_v17 = vld [vmem:[%s2059_s5 + $0x20] sm:$0xff]  ;;  %71 = vperm.xlu1 %1601, %v42_v16   ;;  %v44_v18 = vld [vmem:[%s2059_s5 + $0x28] sm:$0xff]  ;;  %v1689_v25 = vmov 0.0   ;;  %vm473_vm1 = vcmask 1043456  }
   0x8   :  { %v45_v19 = vld [vmem:[%s2059_s5 + $0x30] sm:$0xff]  ;;  %v46_v20 = vld [vmem:[%s2059_s5 + $0x38] sm:$0xff]  ;;  %v234_v21 = vld [vmem:[%s2056_s2] sm:$0xff]  ;;  %1492 = vmatprep.subr.bf16.mxu1 %v1689_v25  ;;  %vm1690_vm2 = vmmov 0   ;;  %vm469_vm3 = vcmask 64512   ;;  %s1691_s17 = smov 120  }
   0x9   :  { %v235_v22 = vld [vmem:[%s2056_s2 + $0x8] sm:$0xff]  ;;  %v1630_v26 = vld [vmem:[%s2058_s4 + $0x20] sm:$0xff]   ;;  %s1693_s19 = smov 16   ;;  %s1694_s20 = smov 24   ;;  %vm901_vm8 = vcmask 130112   ;;  %vm907_vm9 = vcmask 195712  }
   0xa   :  { %61 = vperm.xlu0 %1600, %v40_v15   ;;  %v236_v23 = vpack.c.bf16 %v235_v22, %v234_v21  ;;  %v1631_v27 = vld [vmem:[%s2058_s4 + $0x28] sm:$0xff]   ;;  %v50_v22 = vld [vmem:[%s2059_s5 + $0x58] sm:$0xff]  ;;  %vm913_vm10 = vcmask 261312   ;;  %s1695_s21 = smov [#allocation2]  }
   0xb   :  { %153 = vperm.xlu1 %1601, %v44_v18   ;;  %s1394_s22 = sshll.u32 %s1695_s21, 4  ;;  %s1395_s22 = int_to_ptr.vmem [resolvable:$true] %s1394_s22 }
   0xc   :  { %1477 = vmatmul.mubr.msk.bf16.vlgmr.msra.gmra.mrb[0].mxu0 %vm84_vm0, %v1628_v12  ;;  %1590 = vmatprep.subr.msk.bf16.mxu0 %vm84_vm0, %v236_v23  ;;  %v274_v24 = vsel %vm84_vm0, %v236_v23, 0  ;;  %s1664_s23 = scalar_lea.vmem %s1395_s22, 256  ;;  %p1669_p1 = scmp.lt.s32.totalorder %s1395_s22, %s1395_s22 }
   0xd   :  { %1483 = vmatmul.mubr.msk.bf16.vlgmr.msra.gmra.mrb[0].mxu1 %vm84_vm0, %v1629_v14  ;;  %1487 = vmatpush3.bf16.xpose.msra.mxu0 %v274_v24  ;;  %p1665_p0 = scmp.ne.s32.totalorder %s1395_s22, %s1664_s23  ;;  %p1670_p2 = scmp.lt.s32.totalorder %s1664_s23, %s1664_s23 }
   0xe   :  { %148 = vperm.xlu0 %1600, %v43_v17   ;;  %1498 = vmatprep.subr.bf16.mxu0 %v1689_v25 }
   0xf   :  { %163 = vperm.xlu1 %1601, %v46_v20   ;;  %1488 = vmatprep.mubr.msk.bf16.mxu0 %vm84_vm0, %v1630_v26  ;;  %p1671_p3 = por %p1670_p2, %p1669_p1 }
  0x10   :  { %1494 = vmatprep.mubr.msk.bf16.mxu1 %vm1690_vm2, %v1689_v25 }
  0x11   :  { %p1672_p4 = pnand %p1671_p3, %p1665_p0 }
  0x12   :  { %158 = vperm.xlu0 %1600, %v45_v19   ;;  %v465_v19 = vld [vmem:[%s2057_s3] sm:$0x3] }
  0x13   :  { %vm467_vm4 = vnez %v465_v19 }
  0x14   :  { %1489 = vmatmul.mubr.msk.bf16.vlgmr.msra.gmra.mrb[4].mxu0 %vm84_vm0, %v1631_v27  ;;  %v655_v20 = vsel %vm467_vm4, 16843009, %v1688_v5 }
  0x15   :  { %1500 = vmatprep.mubr.msk.bf16.mxu0 %vm1690_vm2, %v1689_v25  ;;  %v656_v21 = vunpack.c.0.s8 %v655_v20 }
  0x17   :  { %vm1868_vm5 = vcmp.ne.s32.totalorder %v656_v21, 0  ;;  %v49_v21 = vld [vmem:[%s2059_s5 + $0x50] sm:$0xff] }
  0x82   :  { %v67_v29 = vpop.permute.xlu1 %66 }
  0x85   :  { %v57_v28 = vpop.permute.xlu0 %56 }
  0x86   :  { %v72_v31 = vpop.permute.xlu1 %71 }
  0x89   :  { %v62_v30 = vpop.permute.xlu0 %61 }
  0x8a   :  { %v154_v44 = vpop.permute.xlu1 %153 }
  0x8d   :  { %v149_v32 = vpop.permute.xlu0 %148 }
  0x8e   :  { %v164_v58 = vpop.permute.xlu1 %163 }
  0x91   :  { %v159_v59 = vpop.permute.xlu0 %158 }
  0xdf   :  { %v1478_v33 = vpop.f32.mrb[0].mxu0 }
  0xe0   :  { %v1484_v34 = vpop.f32.mrb[0].mxu1  ;;  %v128_v35 = vpop.f32.mrb[1].mxu0  ;;  %v137_v38 = vadd.f32 %v1478_v33, %v67_v29 }
  0xe1   :  { %v219_v36 = vpop.f32.mrb[1].mxu1  ;;  %v1479_v37 = vpop.f32.mrb[2].mxu0  ;;  %v129_v43 = vadd.f32 %v128_v35, %v57_v28  ;;  %v228_v60 = vadd.f32 %v1484_v34, %v159_v59 }
  0xe2   :  { %v220_v39 = vadd.f32 %v219_v36, %v149_v32  ;;  %v140_v40 = vadd.f32 %v1479_v37, %v72_v31  ;;  %v131_v41 = vpop.f32.mrb[3].mxu0  ;;  %v1485_v42 = vpop.f32.mrb[2].mxu1 }
  0xe3   :  { %v132_v45 = vadd.f32 %v131_v41, %v62_v30  ;;  %v222_v46 = vpop.f32.mrb[3].mxu1  ;;  %v231_v61 = vadd.f32 %v1485_v42, %v164_v58  ;;  %v1830_v0 = vpack.c.bf16 %v228_v60, %v228_v60 }
  0xe4   :  { %v1808_v47 = vpack.c.bf16 %v220_v39, %v220_v39  ;;  %v1614_v48 = vpack.i.bf16 %v140_v40, %v137_v38  ;;  %v223_v49 = vadd.f32 %v222_v46, %v154_v44 }
  0xe5   :  { %v1602_v50 = vpack.i.bf16 %v132_v45, %v129_v43  ;;  %v1832_v1 = vpack.c.bf16 %v231_v61, %v231_v61  ;;  %v567_v11 = vsel %vm473_vm1, %v1830_v0, 0 }
  0xe6   :  { %v475_v51 = vsel %vm473_vm1, %v1808_v47, 0  ;;  %v1812_v52 = vpack.c.bf16 %v223_v49, %v223_v49  ;;  %1615 = vxpose.xlu1.b32.start.end [1/1] (short) (narrow) %v1614_v48, 16  ;;  %v47_v49 = vld [vmem:[%s2059_s5 + $0x40] sm:$0xff] }
  0xe7   :  { %1493 = vmatpush3.bf16.msra.mxu1 %v475_v51  ;;  %1603 = vxpose.xlu0.b32.start.end [1/1] (short) (narrow) %v1602_v50, 16  ;;  %v1822_v54 = vpop.f32.mrb[4].mxu0  ;;  %v613_v12 = vsel %vm473_vm1, %v1832_v1, 0 }
  0xe8   :  { %v521_v53 = vsel %vm473_vm1, %v1812_v52, 0  ;;  %1504 = vmatprep.subr.bf16.mxu1 %v1689_v25  ;;  %v1824_v55 = vpop.f32.mrb[5].mxu0 }
  0xe9   :  { %1499 = vmatpush3.bf16.msra.mxu0 %v521_v53  ;;  %v1826_v56 = vpop.f32.mrb[6].mxu0 }
  0xea   :  { %1510 = vmatprep.subr.bf16.mxu0 %v1689_v25  ;;  %v1828_v57 = vpop.f32.mrb[7].mxu0 }
 0x166   :  { %v1616_v62 = vpop.trf.xlu1 }
 0x167   :  { %v1604_v63 = vpop.trf.xlu0  ;;  %v1620_v13 = vunpack.i.h.bf16 %v1616_v62  ;;  %v1617_v14 = vunpack.i.l.bf16 %v1616_v62 }
 0x168   :  { %v1608_v3 = vunpack.i.h.bf16 %v1604_v63  ;;  %v1605_v4 = vunpack.i.l.bf16 %v1604_v63 }
 0x16a   :  { %v1621_v2 = vpop.trf.xlu1 }
 0x16b   :  { %v1609_v6 = vpop.trf.xlu0  ;;  %v1625_v15 = vunpack.i.h.bf16 %v1621_v2  ;;  %v1622_v16 = vunpack.i.l.bf16 %v1621_v2 }
 0x16c   :  { %v1613_v7 = vunpack.i.h.bf16 %v1609_v6  ;;  %v1610_v8 = vunpack.i.l.bf16 %v1609_v6 }
 0x16d   :  { %v1852_v17 = vpack.c.bf16 %v1622_v16, %v1617_v14  ;;  %v1854_v18 = vpack.c.bf16 %v1625_v15, %v1620_v13 }
 0x16e   :  { %v1834_v9 = vpack.c.bf16 %v1610_v8, %v1605_v4  ;;  %v1836_v10 = vpack.c.bf16 %v1613_v7, %v1608_v3 }
 0x170   :  { %1495 = vmatmul.mubr.msk.bf16.vlgmr.msra.gmra.mrb[4].mxu1 %vm469_vm3, %v1834_v9  ;;  %1501 = vmatmul.mubr.msk.bf16.vlgmr.msra.gmra.mrb[8].mxu0 %vm469_vm3, %v1836_v10 }
 0x171   :  { %1505 = vmatpush3.bf16.msra.mxu1 %v567_v11  ;;  %1511 = vmatpush3.bf16.msra.mxu0 %v613_v12 }
 0x172   :  { %1506 = vmatprep.mubr.msk.bf16.mxu1 %vm1690_vm2, %v1689_v25  ;;  %1512 = vmatprep.mubr.msk.bf16.mxu0 %vm1690_vm2, %v1689_v25 }
 0x173   :  { %1516 = vmatprep.subr.bf16.mxu1 %v1689_v25  ;;  %1522 = vmatprep.subr.bf16.mxu0 %v1689_v25 }
 0x178   :  { %1507 = vmatmul.mubr.msk.bf16.vlgmr.msra.gmra.mrb[8].mxu1 %vm469_vm3, %v1852_v17  ;;  %1513 = vmatmul.mubr.msk.bf16.vlgmr.msra.gmra.mrb[12].mxu0 %vm469_vm3, %v1854_v18 }
 0x179   :  { %1518 = vmatprep.mubr.msk.bf16.mxu1 %vm1690_vm2, %v1689_v25  ;;  %1524 = vmatprep.mubr.msk.bf16.mxu0 %vm1690_vm2, %v1689_v25 }
 0x243   :  { %v511_v23 = vpop.f32.mrb[4].mxu1  ;;  %v557_v24 = vpop.f32.mrb[8].mxu0 }
 0x244   :  { %v660_v26 = vsel %vm1868_vm5, -1000.0, %v511_v23  ;;  %v661_v27 = vsel %vm1868_vm5, -1000.0, %v557_v24  ;;  %v1496_v28 = vpop.f32.mrb[5].mxu1  ;;  %v1502_v29 = vpop.f32.mrb[9].mxu0  ;;  %v48_v23 = vld [vmem:[%s2059_s5 + $0x48] sm:$0xff] }
 0x245   :  { %v514_v30 = vpop.f32.mrb[6].mxu1  ;;  %v560_v31 = vpop.f32.mrb[10].mxu0  ;;  %v667_v32 = vsel %vm469_vm3, %v661_v27, -inf  ;;  %v664_v33 = vsel %vm469_vm3, %v660_v26, -inf }
 0x246   :  { %668 = vmax.xlane.f32.xlu1 %v667_v32  ;;  %v1503_v34 = vpop.f32.mrb[11].mxu0  ;;  %665 = vmax.xlane.f32.xlu0 %v664_v33  ;;  %v1497_v35 = vpop.f32.mrb[7].mxu1 }
 0x24b   :  { %v603_v36 = vpop.f32.mrb[8].mxu1  ;;  %v649_v37 = vpop.f32.mrb[12].mxu0 }
 0x24c   :  { %v662_v38 = vsel %vm1868_vm5, -1000.0, %v603_v36  ;;  %v1508_v39 = vpop.f32.mrb[9].mxu1  ;;  %v1514_v40 = vpop.f32.mrb[13].mxu0  ;;  %v663_v44 = vsel %vm1868_vm5, -1000.0, %v649_v37 }
 0x24d   :  { %v606_v41 = vpop.f32.mrb[10].mxu1  ;;  %v652_v42 = vpop.f32.mrb[14].mxu0  ;;  %v670_v43 = vsel %vm469_vm3, %v662_v38, -inf  ;;  %v673_v48 = vsel %vm469_vm3, %v663_v44, -inf }
 0x24e   :  { %v1515_v45 = vpop.f32.mrb[15].mxu0  ;;  %671 = vmax.xlane.f32.xlu0 %v670_v43  ;;  %v1509_v46 = vpop.f32.mrb[11].mxu1 }
 0x252   :  { %674 = vmax.xlane.f32.xlu0 %v673_v48 }
 0x257   :  { %239 = vperm.xlu1 %1601, %v47_v49  }
 0x2d3   :  { %v669_v50 = vpop.xlane.xlu1 %668  ;;  %v666_v51 = vpop.xlane.xlu0 %665 }
 0x2d4   :  { %v677_v53 = vsub.f32 %v661_v27, %v669_v50  ;;  %v676_v58 = vsub.f32 %v660_v26, %v666_v51  ;;  %v1018_v51 = vrot.slane %v1852_v17, 4 }
 0x2d6   :  { %v682_v59 = vmul.f32 1.442695, %v677_v53  ;;  %v680_v60 = vmul.f32 1.442695, %v676_v58 }
 0x2d7   :  { %v240_v61 = vpop.permute.xlu1 %239 }
 0x2d8   :  { %1632 = vpow2.f32 %v682_v59  ;;  %v311_v62 = vadd.f32 %v1824_v55, %v240_v61  ;;  %v1069_v61 = vrot.slane %v1854_v18, 4 }
 0x2d9   :  { %1634 = vpow2.f32 %v680_v60  ;;  %v967_v60 = vrot.slane %v1836_v10, 4 }
 0x2da   :  { %v1888_v63 = vpack.c.bf16 %v311_v62, %v311_v62 }
 0x2db   :  { %v672_v2 = vpop.xlane.xlu0 %671 }
 0x2dc   :  { %v716_v3 = vsel %vm469_vm3, %v1888_v63, 0  ;;  %v678_v4 = vsub.f32 %v662_v38, %v672_v2  ;;  %v466_v2 = vld [vmem:[%s2057_s3 + $0x2] sm:$0x3]  ;;  %s1692_s3 = smov 8  }
 0x2dd   :  { %1517 = vmatpush3.bf16.xpose.msra.mxu1 %v716_v3  ;;  %vm468_vm6 = vnez %v466_v2 }
 0x2de   :  { %v684_v6 = vmul.f32 1.442695, %v678_v4  ;;  %1528 = vmatprep.subr.bf16.mxu1 %v1689_v25 }
 0x2df   :  { %v675_v7 = vpop.xlane.xlu0 %674 }
 0x2e0   :  { %1636 = vpow2.f32 %v684_v6  ;;  %v679_v8 = vsub.f32 %v663_v44, %v675_v7  ;;  %v916_v44 = vrot.slane %v1834_v9, 4  ;;  %v1119_v6 = vsel %vm468_vm6, 16843009, %v1688_v5 }
 0x2e2   :  { %v1633_v11 = vpop.eup %1632  ;;  %v686_v12 = vmul.f32 1.442695, %v679_v8 }
 0x2e3   :  { %v1635_v13 = vpop.eup %1634  ;;  %v691_v55 = vsel %vm469_vm3, %v1633_v11, 0.0 }
 0x2e4   :  { %1638 = vpow2.f32 %v686_v12  ;;  %v688_v14 = vsel %vm469_vm3, %v1635_v13, 0.0  ;;  %692 = vadd.xlane.f32.xlu0 %v691_v55 }
 0x2e5   :  { %689 = vadd.xlane.f32.xlu1 %v688_v14 }
 0x2ea   :  { %v1637_v15 = vpop.eup %1636 }
 0x2eb   :  { %v694_v16 = vsel %vm469_vm3, %v1637_v15, 0.0 }
 0x2ec   :  { %695 = vadd.xlane.f32.xlu1 %v694_v16 }
 0x2ee   :  { %v1896_v19 = vpop.eup %1638 }
 0x2ef   :  { %v697_v20 = vsel %vm469_vm3, %v1896_v19, 0.0 }
 0x2f0   :  { %698 = vadd.xlane.f32.xlu0 %v697_v20 }
 0x2fd   :  { %249 = vperm.xlu1 %1601, %v49_v21  }
 0x301   :  { %254 = vperm.xlu1 %1601, %v50_v22  }
 0x305   :  { %969 = vrot.lane.b32.xlu1 %v1812_v52, %s1691_s17 }
 0x306   :  { %244 = vperm.xlu0 %1600, %v48_v23  }
 0x309   :  { %1071 = vrot.lane.b32.xlu1 %v1832_v1, %s1691_s17 }
 0x30a   :  { %918 = vrot.lane.b32.xlu0 %v1808_v47, %s1691_s17 }
 0x30e   :  { %1020 = vrot.lane.b32.xlu0 %v1830_v0, %s1691_s17 }
 0x371   :  { %v693_v27 = vpop.xlane.xlu0 %692 }
 0x372   :  { %v690_v24 = vpop.xlane.xlu1 %689 }
 0x373   :  { %1640 = vrcp.f32 %v690_v24 }
 0x379   :  { %v696_v26 = vpop.xlane.xlu1 %695 }
 0x37a   :  { %1642 = vrcp.f32 %v696_v26 }
 0x37b   :  { %1644 = vrcp.f32 %v693_v27 }
 0x37d   :  { %v1641_v28 = vpop.eup %1640  ;;  %v250_v29 = vpop.permute.xlu1 %249 }
 0x37e   :  { %v704_v30 = vmul.f32 %v1641_v28, %v1635_v13  ;;  %v319_v52 = vadd.f32 %v1822_v54, %v250_v29  ;;  %v699_v32 = vpop.xlane.xlu0 %698 }
 0x37f   :  { %1646 = vrcp.f32 %v699_v32 }
 0x380   :  { %v1918_v31 = vpack.c.bf16 %v319_v52, %v319_v52  ;;  %v708_v1 = vpack.c.bf16 %v704_v30, %v704_v30 }
 0x381   :  { %v255_v35 = vpop.permute.xlu1 %254 }
 0x382   :  { %v808_v47 = vsel %vm469_vm3, %v1918_v31, 0  ;;  %1519 = vmatmul.mubr.msk.bf16.vlgmr.msra.gmra.mrb[12].mxu1 %vm469_vm3, %v708_v1  ;;  %v322_v40 = vadd.f32 %v1826_v56, %v255_v35 }
 0x383   :  { %1529 = vmatpush3.bf16.xpose.msra.mxu1 %v808_v47  ;;  %1530 = vmatprep.mubr.msk.bf16.mxu1 %vm1690_vm2, %v1689_v25 }
 0x384   :  { %v1643_v0 = vpop.eup %1642  ;;  %1540 = vmatprep.subr.bf16.mxu1 %v1689_v25 }
 0x385   :  { %v706_v33 = vmul.f32 %v1643_v0, %v1637_v15  ;;  %v245_v34 = vpop.permute.xlu0 %244  ;;  %v1645_v38 = vpop.eup %1644 }
 0x386   :  { %v314_v54 = vadd.f32 %v1828_v57, %v245_v34  ;;  %v705_v43 = vmul.f32 %v1645_v38, %v1633_v11  ;;  %v1938_v57 = vpack.c.bf16 %v322_v40, %v322_v40  ;;  %v970_v9 = vpop.permute.xlu1 %969  ;;  %v1120_v11 = vunpack.c.0.s8 %v1119_v6 }
 0x387   :  { %v710_v36 = vpack.c.bf16 %v706_v33, %v706_v33  ;;  %v975_v58 = vsel %vm473_vm1, %v970_v9, 0 }
 0x388   :  { %v1927_v37 = vpack.c.bf16 %v314_v54, %v314_v54  ;;  %v709_v45 = vpack.c.bf16 %v705_v43, %v705_v43  ;;  %v854_v48 = vsel %vm469_vm3, %v1938_v57, 0  ;;  %vm1979_vm7 = vcmp.ne.s32.totalorder %v1120_v11, 0 }
 0x389   :  { %v919_v39 = vpop.permute.xlu0 %918  ;;  %v1647_v46 = vpop.eup %1646 }
 0x38a   :  { %v762_v41 = vsel %vm469_vm3, %v1927_v37, 0  ;;  %v924_v42 = vsel %vm473_vm1, %v919_v39, 0  ;;  %1531 = vmatmul.mubr.msk.bf16.vlgmr.msra.gmra.mrb[16].mxu1 %vm469_vm3, %v710_v36  ;;  %v707_v50 = vmul.f32 %v1647_v46, %v1896_v19  ;;  %v1072_v59 = vpop.permute.xlu1 %1071 }
 0x38b   :  { %1523 = vmatpush3.bf16.xpose.msra.mxu0 %v762_v41  ;;  %1541 = vmatpush3.bf16.msra.mxu1 %v924_v42  ;;  %v1077_v17 = vsel %vm473_vm1, %v1072_v59, 0 }
 0x38c   :  { %1542 = vmatprep.mubr.msk.bf16.mxu1 %vm1690_vm2, %v1689_v25  ;;  %1552 = vmatprep.subr.bf16.mxu1 %v1689_v25  ;;  %v711_v53 = vpack.c.bf16 %v707_v50, %v707_v50 }
 0x38d   :  { %1534 = vmatprep.subr.bf16.mxu0 %v1689_v25  ;;  %v1021_v56 = vpop.permute.xlu0 %1020 }
 0x38e   :  { %v1026_v49 = vsel %vm473_vm1, %v1021_v56, 0 }
 0x392   :  { %1525 = vmatmul.mubr.msk.bf16.vlgmr.msra.gmra.mrb[16].mxu0 %vm469_vm3, %v709_v45  ;;  %1543 = vmatmul.mubr.msk.bf16.vlgmr.msra.gmra.mrb[20].mxu1 %vm469_vm3, %v916_v44 }
 0x393   :  { %1553 = vmatpush3.bf16.msra.mxu1 %v1026_v49  ;;  %1535 = vmatpush3.bf16.xpose.msra.mxu0 %v854_v48 }
 0x394   :  { %1536 = vmatprep.mubr.msk.bf16.mxu0 %vm1690_vm2, %v1689_v25  ;;  %1554 = vmatprep.mubr.msk.bf16.mxu1 %vm1690_vm2, %v1689_v25 }
 0x395   :  { %1546 = vmatprep.subr.bf16.mxu0 %v1689_v25  ;;  %1564 = vmatprep.subr.bf16.mxu1 %v1689_v25 }
 0x39a   :  { %1537 = vmatmul.mubr.msk.bf16.vlgmr.msra.gmra.mrb[20].mxu0 %vm469_vm3, %v711_v53  ;;  %1555 = vmatmul.mubr.msk.bf16.vlgmr.msra.gmra.mrb[24].mxu1 %vm469_vm3, %v1018_v51 }
 0x39b   :  { %1547 = vmatpush3.bf16.msra.mxu0 %v975_v58  ;;  %1548 = vmatprep.mubr.msk.bf16.mxu0 %vm1690_vm2, %v1689_v25 }
 0x39c   :  { %1558 = vmatprep.subr.bf16.mxu0 %v1689_v25  ;;  %1566 = vmatprep.mubr.msk.bf16.mxu1 %vm1690_vm2, %v1689_v25 }
 0x3a2   :  { %1549 = vmatmul.mubr.msk.bf16.vlgmr.msra.gmra.mrb[24].mxu0 %vm469_vm3, %v967_v60 }
 0x3a3   :  { %1559 = vmatpush3.bf16.msra.mxu0 %v1077_v17  ;;  %1560 = vmatprep.mubr.msk.bf16.mxu0 %vm1690_vm2, %v1689_v25 }
 0x3a4   :  { %1570 = vmatprep.subr.bf16.mxu0 %v1689_v25 }
 0x3aa   :  { %1561 = vmatmul.mubr.msk.bf16.vlgmr.msra.gmra.mrb[28].mxu0 %vm469_vm3, %v1069_v61 }
 0x3ab   :  { %1572 = vmatprep.mubr.msk.bf16.mxu0 %vm1690_vm2, %v1689_v25 }
 0x455   :  { %v752_v62 = vpop.f32.mrb[12].mxu1 }
 0x456   :  { %896 = vst.msk [vmem:[#allocation2] sm:$0xff] %vm469_vm3, %v752_v62  ;;  %v1520_v10 = vpop.f32.mrb[13].mxu1 }
 0x457   :  { %v755_v3 = vpop.f32.mrb[14].mxu1 }
 0x458   :  { %v1521_v4 = vpop.f32.mrb[15].mxu1 }
 0x45d   :  { %v1977_v7 = vpop.f32.mrb[16].mxu1 }
 0x45e   :  { %v1532_v18 = vpop.f32.mrb[17].mxu1 }
 0x45f   :  { %v847_v8 = vpop.f32.mrb[18].mxu1 }
 0x460   :  { %v1533_v12 = vpop.f32.mrb[19].mxu1 }
 0x465   :  { %v1983_v55 = vpop.f32.mrb[16].mxu0  ;;  %v960_v14 = vpop.f32.mrb[20].mxu1 }
 0x466   :  { %v1124_v15 = vsel %vm1979_vm7, -1000.0, %v960_v14  ;;  %v1526_v16 = vpop.f32.mrb[17].mxu0  ;;  %v1544_v19 = vpop.f32.mrb[21].mxu1 }
 0x467   :  { %v801_v20 = vpop.f32.mrb[18].mxu0  ;;  %v963_v5 = vpop.f32.mrb[22].mxu1  ;;  %v1128_v21 = vsel %vm469_vm3, %v1124_v15, -inf }
 0x468   :  { %v1527_v22 = vpop.f32.mrb[19].mxu0  ;;  %1129 = vmax.xlane.f32.xlu0 %v1128_v21  ;;  %v1545_v23 = vpop.f32.mrb[23].mxu1 }
 0x46d   :  { %v1988_v24 = vpop.f32.mrb[20].mxu0  ;;  %v1062_v26 = vpop.f32.mrb[24].mxu1 }
 0x46e   :  { %v1126_v27 = vsel %vm1979_vm7, -1000.0, %v1062_v26  ;;  %v1538_v28 = vpop.f32.mrb[21].mxu0  ;;  %v1556_v29 = vpop.f32.mrb[25].mxu1 }
 0x46f   :  { %v893_v30 = vpop.f32.mrb[22].mxu0  ;;  %v1065_v52 = vpop.f32.mrb[26].mxu1  ;;  %v1134_v1 = vsel %vm469_vm3, %v1126_v27, -inf }
 0x470   :  { %v1539_v32 = vpop.f32.mrb[23].mxu0  ;;  %1135 = vmax.xlane.f32.xlu0 %v1134_v1  ;;  %v1557_v47 = vpop.f32.mrb[27].mxu1 }
 0x475   :  { %v1011_v0 = vpop.f32.mrb[24].mxu0 }
 0x476   :  { %v1125_v33 = vsel %vm1979_vm7, -1000.0, %v1011_v0  ;;  %v1550_v34 = vpop.f32.mrb[25].mxu0 }
 0x477   :  { %v1014_v54 = vpop.f32.mrb[26].mxu0  ;;  %v1131_v35 = vsel %vm469_vm3, %v1125_v33, -inf }
 0x478   :  { %1132 = vmax.xlane.f32.xlu1 %v1131_v35  ;;  %v1551_v36 = vpop.f32.mrb[27].mxu0 }
 0x47d   :  { %v1113_v38 = vpop.f32.mrb[28].mxu0 }
 0x47e   :  { %v1127_v39 = vsel %vm1979_vm7, -1000.0, %v1113_v38  ;;  %v1562_v40 = vpop.f32.mrb[29].mxu0 }
 0x47f   :  { %v1116_v41 = vpop.f32.mrb[30].mxu0  ;;  %v1137_v42 = vsel %vm469_vm3, %v1127_v39, -inf }
 0x480   :  { %v1563_v43 = vpop.f32.mrb[31].mxu0  ;;  %1138 = vmax.xlane.f32.xlu0 %v1137_v42 }
 0x489   :  { %1177 = vrot.lane.b32.xlu1 %v1888_v63, %s1691_s17 }
 0x4f5   :  { %v1130_v56 = vpop.xlane.xlu0 %1129 }
 0x4f6   :  { %v1140_v44 = vsub.f32 %v1124_v15, %v1130_v56 }
 0x4f8   :  { %v1144_v45 = vmul.f32 1.442695, %v1140_v44 }
 0x4fa   :  { %1648 = vpow2.f32 %v1144_v45 }
 0x4fd   :  { %v1136_v46 = vpop.xlane.xlu0 %1135 }
 0x4fe   :  { %v1142_v48 = vsub.f32 %v1126_v27, %v1136_v46 }
 0x500   :  { %v1148_v49 = vmul.f32 1.442695, %v1142_v48 }
 0x502   :  { %1650 = vpow2.f32 %v1148_v49 }
 0x504   :  { %v1649_v50 = vpop.eup %1648 }
 0x505   :  { %v1133_v9 = vpop.xlane.xlu1 %1132  ;;  %v1152_v51 = vsel %vm469_vm3, %v1649_v50, 0.0 }
 0x506   :  { %v1141_v53 = vsub.f32 %v1125_v33, %v1133_v9  ;;  %1153 = vadd.xlane.f32.xlu1 %v1152_v51 }
 0x508   :  { %v1146_v58 = vmul.f32 1.442695, %v1141_v53 }
 0x509   :  { %v1178_v59 = vpop.permute.xlu1 %1177 }
 0x50a   :  { %1652 = vpow2.f32 %v1146_v58  ;;  %v1183_v60 = vsel %vm469_vm3, %v1178_v59, 0 }
 0x50b   :  { %1565 = vmatpush3.bf16.xpose.msra.mxu1 %v1183_v60 }
 0x50c   :  { %v1651_v63 = vpop.eup %1650  ;;  %1576 = vmatprep.subr.bf16.mxu1 %v1689_v25 }
 0x50d   :  { %v1139_v17 = vpop.xlane.xlu0 %1138  ;;  %v1158_v61 = vsel %vm469_vm3, %v1651_v63, 0.0 }
 0x50e   :  { %v1143_v62 = vsub.f32 %v1127_v39, %v1139_v17  ;;  %1159 = vadd.xlane.f32.xlu1 %v1158_v61 }
 0x510   :  { %v1150_v10 = vmul.f32 1.442695, %v1143_v62 }
 0x512   :  { %1654 = vpow2.f32 %v1150_v10 }
 0x514   :  { %v1653_v2 = vpop.eup %1652 }
 0x515   :  { %v1155_v3 = vsel %vm469_vm3, %v1653_v2, 0.0 }
 0x516   :  { %1156 = vadd.xlane.f32.xlu0 %v1155_v3 }
 0x51c   :  { %v1655_v4 = vpop.eup %1654 }
 0x51d   :  { %v1161_v6 = vsel %vm469_vm3, %v1655_v4, 0.0 }
 0x51e   :  { %1162 = vadd.xlane.f32.xlu0 %v1161_v6 }
 0x51f   :  { %1275 = vrot.lane.b32.xlu1 %v1918_v31, %s1691_s17 }
 0x523   :  { %1324 = vrot.lane.b32.xlu1 %v1938_v57, %s1691_s17 }
 0x534   :  { %1226 = vrot.lane.b32.xlu0 %v1927_v37, %s1691_s17 }
 0x538   :  { %898 = vrot.lane.b32.xlu0 %v1983_v55, %s1692_s3 }
 0x53c   :  { %904 = vrot.lane.b32.xlu0 %v1977_v7, %s1693_s19 }
 0x540   :  { %910 = vrot.lane.b32.xlu0 %v1988_v24, %s1694_s20 }
 0x593   :  { %v1154_v18 = vpop.xlane.xlu1 %1153 }
 0x594   :  { %1656 = vrcp.f32 %v1154_v18 }
 0x59b   :  { %v1160_v31 = vpop.xlane.xlu1 %1159 }
 0x59c   :  { %1658 = vrcp.f32 %v1160_v31 }
 0x59e   :  { %v1657_v57 = vpop.eup %1656 }
 0x59f   :  { %v1168_v8 = vmul.f32 %v1657_v57, %v1649_v50  ;;  %v1276_v11 = vpop.permute.xlu1 %1275 }
 0x5a0   :  { %v1281_v12 = vsel %vm469_vm3, %v1276_v11, 0 }
 0x5a1   :  { %v1172_v37 = vpack.c.bf16 %v1168_v8, %v1168_v8 }
 0x5a3   :  { %1567 = vmatmul.mubr.msk.bf16.vlgmr.msra.gmra.mrb[28].mxu1 %vm469_vm3, %v1172_v37  ;;  %v1157_v13 = vpop.xlane.xlu0 %1156  ;;  %v1325_v22 = vpop.permute.xlu1 %1324 }
 0x5a4   :  { %1577 = vmatpush3.bf16.xpose.msra.mxu1 %v1281_v12  ;;  %1578 = vmatprep.mubr.msk.bf16.mxu1 %vm1690_vm2, %v1689_v25  ;;  %1660 = vrcp.f32 %v1157_v13  ;;  %v1330_v27 = vsel %vm469_vm3, %v1325_v22, 0 }
 0x5a6   :  { %v1659_v7 = vpop.eup %1658 }
 0x5a7   :  { %v1170_v55 = vmul.f32 %v1659_v7, %v1651_v63 }
 0x5a9   :  { %v1174_v14 = vpack.c.bf16 %v1170_v55, %v1170_v55 }
 0x5ab   :  { %1579 = vmatmul.mubr.msk.bf16.vlgmr.msra.gmra.mrb[32].mxu1 %vm469_vm3, %v1174_v14  ;;  %v1163_v15 = vpop.xlane.xlu0 %1162 }
 0x5ac   :  { %1662 = vrcp.f32 %v1163_v15 }
 0x5ae   :  { %v1661_v16 = vpop.eup %1660 }
 0x5af   :  { %v1227_v19 = vpop.permute.xlu0 %1226  ;;  %v1169_v5 = vmul.f32 %v1661_v16, %v1653_v2 }
 0x5b0   :  { %v1232_v20 = vsel %vm469_vm3, %v1227_v19, 0 }
 0x5b1   :  { %1571 = vmatpush3.bf16.xpose.msra.mxu0 %v1232_v20  ;;  %v1173_v23 = vpack.c.bf16 %v1169_v5, %v1169_v5 }
 0x5b2   :  { %1582 = vmatprep.subr.bf16.mxu0 %v1689_v25 }
 0x5b3   :  { %v899_v21 = vpop.permute.xlu0 %898 }
 0x5b4   :  { %902 = vst.msk [vmem:[#allocation2] sm:$0xff] %vm901_vm8, %v899_v21 }
 0x5b6   :  { %v1663_v24 = vpop.eup %1662 }
 0x5b7   :  { %v905_v26 = vpop.permute.xlu0 %904  ;;  %v1171_v28 = vmul.f32 %v1663_v24, %v1655_v4 }
 0x5b8   :  { %908 = vst.msk [vmem:[#allocation2] sm:$0xff] %vm907_vm9, %v905_v26  ;;  %1573 = vmatmul.mubr.msk.bf16.vlgmr.msra.gmra.mrb[32].mxu0 %vm469_vm3, %v1173_v23 }
 0x5b9   :  { %1583 = vmatpush3.bf16.xpose.msra.mxu0 %v1330_v27  ;;  %1584 = vmatprep.mubr.msk.bf16.mxu0 %vm1690_vm2, %v1689_v25  ;;  %v1175_v30 = vpack.c.bf16 %v1171_v28, %v1171_v28 }
 0x5bb   :  { %v911_v29 = vpop.permute.xlu0 %910 }
 0x5bc   :  { %914 = vst.msk [vmem:[#allocation2] sm:$0xff] %vm913_vm10, %v911_v29 }
 0x5c0   :  { %1585 = vmatmul.mubr.msk.bf16.vlgmr.msra.gmra.mrb[36].mxu0 %vm469_vm3, %v1175_v30 }
 0x676   :  { %v1219_v52 = vpop.f32.mrb[28].mxu1 }
 0x677   :  { %1373 = vst.msk [vmem:[#allocation2 + $0x8] sm:$0xff] %vm469_vm3, %v1219_v52  ;;  %v1568_v1 = vpop.f32.mrb[29].mxu1 }
 0x678   :  { %v1222_v32 = vpop.f32.mrb[30].mxu1 }
 0x679   :  { %v1569_v47 = vpop.f32.mrb[31].mxu1 }
 0x67e   :  { %v1317_v0 = vpop.f32.mrb[32].mxu1 }
 0x67f   :  { %v1580_v33 = vpop.f32.mrb[33].mxu1 }
 0x680   :  { %v1320_v34 = vpop.f32.mrb[34].mxu1 }
 0x681   :  { %v1581_v54 = vpop.f32.mrb[35].mxu1 }
 0x68b   :  { %v1268_v35 = vpop.f32.mrb[32].mxu0 }
 0x68c   :  { %1375 = vrot.lane.b32.xlu1 %v1268_v35, %s1692_s3  ;;  %v1574_v25 = vpop.f32.mrb[33].mxu0 }
 0x68d   :  { %v1271_v36 = vpop.f32.mrb[34].mxu0 }
 0x68e   :  { %v1575_v38 = vpop.f32.mrb[35].mxu0 }
 0x690   :  { %1380 = vrot.lane.b32.xlu1 %v1317_v0, %s1693_s19 }
 0x693   :  { %v1366_v39 = vpop.f32.mrb[36].mxu0 }
 0x694   :  { %v1586_v40 = vpop.f32.mrb[37].mxu0  ;;  %1385 = vrot.lane.b32.xlu1 %v1366_v39, %s1694_s20 }
 0x695   :  { %v1369_v41 = vpop.f32.mrb[38].mxu0 }
 0x696   :  { %v1587_v42 = vpop.f32.mrb[39].mxu0 }
 0x6fe   :  { %v1376_v43 = vpop.permute.xlu1 %1375 }
 0x6ff   :  { %1378 = vst.msk [vmem:[#allocation2 + $0x8] sm:$0xff] %vm901_vm8, %v1376_v43 }
 0x702   :  { %v1381_v56 = vpop.permute.xlu1 %1380 }
 0x703   :  { %1383 = vst.msk [vmem:[#allocation2 + $0x8] sm:$0xff] %vm907_vm9, %v1381_v56 }
 0x706   :  { %v1386_v44 = vpop.permute.xlu1 %1385 }
 0x707   :  { %1388 = vst.msk [vmem:[#allocation2 + $0x8] sm:$0xff] %vm913_vm10, %v1386_v44 }
 0x708   :  { %1675 = shalt.err (!%p1672_p4)
}
 0x709   :  { %s1676_s26 = scalar_lea.hbm %s2060_s6, 256 }
 0x70a   :  { %p1677_p5 = scmp.ne.s32.totalorder %s2060_s6, %s1676_s26  ;;  %p1680_p6 = scmp.lt.u32.totalorder %s1676_s26, %s2060_s6 }
 0x70c   :  { %p1682_p7 = pnand %p1680_p6, %p1677_p5 }
 0x70e   :  { %1685 = shalt.err (!%p1682_p7)
}
 0x70f   :  { %s1696_s0 = smov 128  }
 0x710   :  { %1400 = dma.vmem_to_hbm [thread:$0]  %s1395_s22, 256, %s2060_s6, [#allocation3], %s1696_s0, %s1696_s0, %s1692_s3  }
 0x711   :  { %1686 = dma.done.wait [#allocation3], 256  }
 0x712   :  { %1687 = vsyncadd [#allocation3], 4294967040 }
 0x713   :  { %1404 = vsyncpa [#allocation3], 1 }

</bundles_post_ra>
